<compile_context>
chip_gen: v7x
topology: tpu7x:2x2x1
jax: 0.10.0
libtpu: 0.0.40
codegen_flags: <defaults>
</compile_context>

<pallas_src>
import functools

import jax
import jax.numpy as jnp
from jax.experimental import pallas as pl
from jax.experimental.pallas import tpu as pltpu


def _round_up(x: int, m: int) -> int:
    return ((x + m - 1) // m) * m


def _mlp_kernel(x_ref, w1_ref, b1_ref, w2_ref, b2_ref, o_ref):
    # fc1: (TILE_B, F)bf16 @ (F, H_pad)bf16 -> f32 accumulate on the MXU.
    h = jnp.dot(x_ref[...], w1_ref[...], preferred_element_type=jnp.float32)
    h = jnp.maximum(h + b1_ref[...], 0.0)                       # bias + ReLU in f32 (VPU)
    # fc2: (TILE_B, H_pad)bf16 @ (H_pad, C_pad)bf16 -> f32 accumulate.
    out = jnp.dot(h.astype(jnp.bfloat16), w2_ref[...],
                  preferred_element_type=jnp.float32)
    o_ref[...] = out + b2_ref[...]                              # lane-dense f32 store


def prepare_params(w1, b1, w2, b2):
    """One-time (model-load) prep: transpose to (in, out), zero-pad the lane dims
    to multiples of 128, cast weights to bf16. PyTorch nn.Linear layout in:
       w1: (hidden, input)   b1: (hidden,)
       w2: (classes, hidden) b2: (classes,)
    """
    hidden, in_features = w1.shape
    num_classes = w2.shape[0]
    h_pad = _round_up(hidden, 128)
    c_pad = _round_up(num_classes, 128)

    w1_t = jnp.transpose(w1).astype(jnp.bfloat16)               # (F, H)
    w2_t = jnp.transpose(w2).astype(jnp.bfloat16)               # (H, C)

    w1_p = jnp.pad(w1_t, ((0, 0), (0, h_pad - hidden)))                     # (F, H_pad)
    w2_p = jnp.pad(w2_t, ((0, h_pad - hidden), (0, c_pad - num_classes)))   # (H_pad, C_pad)
    b1_p = jnp.pad(b1.astype(jnp.float32), (0, h_pad - hidden)).reshape(1, h_pad)
    b2_p = jnp.pad(b2.astype(jnp.float32), (0, c_pad - num_classes)).reshape(1, c_pad)

    return {
        "w1": w1_p, "b1": b1_p, "w2": w2_p, "b2": b2_p,
        "in_features": in_features, "hidden": hidden, "num_classes": num_classes,
        "h_pad": h_pad, "c_pad": c_pad,
    }


def _pick_tile_b(batch: int, f: int, h_pad: int, c_pad: int,
                 vmem_budget: int = 24 * 1024 * 1024) -> int:
    """Pick a batch tile that keeps the pipelined working set under `vmem_budget`
    (sized conservatively for v7x's 64 MiB physical / 32 MiB scoped-default VMEM)."""
    # VMEM-resident weights + biases.
    resident = f * h_pad * 2 + h_pad * c_pad * 2 + (h_pad + c_pad) * 4
    avail = max(vmem_budget - resident, 1 << 20)
    # Per batch-row: double-buffered bf16 x, double-buffered f32 out, f32 hidden temp.
    per_row = 2 * f * 2 + 2 * c_pad * 4 + h_pad * 4
    tile = max(16, min(512, (avail // per_row // 16) * 16))
    # Don't over-allocate for tiny batches (still a multiple of 8 for sublane tiling).
    return min(tile, _round_up(max(batch, 8), 16))


@jax.jit
def _forward_impl(x_flat, w1_p, b1_p, w2_p, b2_p):
    b, f = x_flat.shape
    h_pad = w1_p.shape[1]
    c_pad = w2_p.shape[1]

    tile_b = _pick_tile_b(b, f, h_pad, c_pad)
    b_pad = _round_up(b, tile_b)

    x_p = jnp.pad(x_flat.astype(jnp.bfloat16), ((0, b_pad - b), (0, 0)))

    # Explicit VMEM footprint estimate + headroom (v7x-safe).
    footprint = (2 * tile_b * f * 2 + f * h_pad * 2 + h_pad * c_pad * 2
                 + (h_pad + c_pad) * 4 + 2 * tile_b * c_pad * 4 + tile_b * h_pad * 4)
    vmem_limit = int(min(64 * 1024 * 1024, max(2 * footprint, 8 * 1024 * 1024)))

    grid = (pl.cdiv(b_pad, tile_b),)
    out = pl.pallas_call(
        _mlp_kernel,
        out_shape=jax.ShapeDtypeStruct((b_pad, c_pad), jnp.float32),
        grid=grid,
        in_specs=[
            pl.BlockSpec((tile_b, f), lambda i: (i, 0)),      # x: streamed per tile
            pl.BlockSpec((f, h_pad), lambda i: (0, 0)),       # W1: VMEM-resident
            pl.BlockSpec((1, h_pad), lambda i: (0, 0)),       # b1: VMEM-resident
            pl.BlockSpec((h_pad, c_pad), lambda i: (0, 0)),   # W2: VMEM-resident
            pl.BlockSpec((1, c_pad), lambda i: (0, 0)),       # b2: VMEM-resident
        ],
        out_specs=pl.BlockSpec((tile_b, c_pad), lambda i: (i, 0)),
        compiler_params=pltpu.CompilerParams(
            dimension_semantics=("parallel",),
            vmem_limit_bytes=vmem_limit,
        ),
    )(x_p, w1_p, b1_p, w2_p, b2_p)
    return out


def simple_dnn_forward(x, params):
    """Forward pass of SimpleDNN.

    x: (B, *) any trailing shape; flattened like x.view(B, -1).
    params: output of prepare_params() (pre-transposed / padded / bf16 weights).
    returns: (B, num_classes) float32 logits.
    """
    b = x.shape[0]
    x_flat = x.reshape(b, -1)
    assert x_flat.shape[1] == params["in_features"]
    out = _forward_impl(x_flat, params["w1"], params["b1"], params["w2"], params["b2"])
    return out[:b, :params["num_classes"]]


def init_params(key, input_size, hidden_size, num_classes):
    """Deterministic nn.Linear-style init (uniform(-1/sqrt(fan_in), 1/sqrt(fan_in)))."""
    k1, k2, k3, k4 = jax.random.split(key, 4)
    bound1 = 1.0 / jnp.sqrt(jnp.float32(input_size))
    bound2 = 1.0 / jnp.sqrt(jnp.float32(hidden_size))
    w1 = jax.random.uniform(k1, (hidden_size, input_size), jnp.float32, -bound1, bound1)
    b1 = jax.random.uniform(k2, (hidden_size,), jnp.float32, -bound1, bound1)
    w2 = jax.random.uniform(k3, (num_classes, hidden_size), jnp.float32, -bound2, bound2)
    b2 = jax.random.uniform(k4, (num_classes,), jnp.float32, -bound2, bound2)
    return w1, b1, w2, b2


if __name__ == "__main__":
    # Small shapes consistent with forward(): a batch of mel spectrograms
    # (B, MEL_BINS, TIME) flattened by x.view(B, -1).
    B, MEL_BINS, TIME = 2, 8, 16
    input_size = MEL_BINS * TIME          # 128
    hidden_size = 64                      # as in the script
    num_classes = 4

    key = jax.random.PRNGKey(0)
    kx, kp = jax.random.split(key)
    x = jax.random.normal(kx, (B, MEL_BINS, TIME), dtype=jnp.float32)
    w1, b1, w2, b2 = init_params(kp, input_size, hidden_size, num_classes)

    params = prepare_params(w1, b1, w2, b2)   # one-time: transpose + pad + bf16 cast
    logits = simple_dnn_forward(x, params)
    jax.block_until_ready(logits)

    # Reference check in plain JAX (same math as nn.Linear), f32.
    x_flat = x.reshape(B, -1)
    ref = jnp.maximum(x_flat @ w1.T + b1, 0.0) @ w2.T + b2
    assert logits.shape == (B, num_classes)
    # bf16 matmul inputs with f32 accumulation -> loosened tolerance.
    assert jnp.allclose(logits, ref, atol=3e-2, rtol=3e-2), (
        f"max abs err {jnp.max(jnp.abs(logits - ref))}")

    print("KERNEL_OK")
</pallas_src>

<mosaic_0001>
module attributes {stable_mosaic.version = 11 : i64} {
  func.func @_mlp_kernel(%arg0: i32, %arg1: memref<16x128xbf16, #tpu.memory_space<vmem>>, %arg2: memref<128x128xbf16, #tpu.memory_space<vmem>>, %arg3: memref<1x128xf32, #tpu.memory_space<vmem>>, %arg4: memref<128x128xbf16, #tpu.memory_space<vmem>>, %arg5: memref<1x128xf32, #tpu.memory_space<vmem>>, %arg6: memref<16x128xf32, #tpu.memory_space<vmem>>) attributes {dimension_semantics = [#tpu.dimension_semantics<parallel>], iteration_bounds = array<i64: 1>, scalar_prefetch = 0 : i64, scratch_operands = 0 : i64, tpu.core_type = #tpu.core_type<tc>, window_params = [{transform_indices = @transform_0, window_bounds = array<i64: 16, 128>}, {pipeline_mode = #tpu.pipeline_mode<synchronous>, transform_indices = @transform_1, window_bounds = array<i64: 128, 128>}, {pipeline_mode = #tpu.pipeline_mode<synchronous>, transform_indices = @transform_2, window_bounds = array<i64: 1, 128>}, {pipeline_mode = #tpu.pipeline_mode<synchronous>, transform_indices = @transform_3, window_bounds = array<i64: 128, 128>}, {pipeline_mode = #tpu.pipeline_mode<synchronous>, transform_indices = @transform_4, window_bounds = array<i64: 1, 128>}, {transform_indices = @transform_5, window_bounds = array<i64: 16, 128>}]} {
    %c0 = arith.constant 0 : index
    %c0_0 = arith.constant 0 : index
    %0 = vector.load %arg1[%c0, %c0_0] : memref<16x128xbf16, #tpu.memory_space<vmem>>, vector<16x128xbf16>
    %c0_1 = arith.constant 0 : index
    %c0_2 = arith.constant 0 : index
    %1 = vector.load %arg2[%c0_1, %c0_2] : memref<128x128xbf16, #tpu.memory_space<vmem>>, vector<128x128xbf16>
    %cst = arith.constant dense<0.000000e+00> : vector<16x128xf32>
    %2 = tpu.matmul %0, %1, %cst {dimension_numbers = #tpu.dot_dimension_numbers<[1], [0], [0], [1], [0, 0, 1, 1], [], []>} : vector<16x128xbf16>, vector<128x128xbf16>, vector<16x128xf32> -> vector<16x128xf32>
    %c0_3 = arith.constant 0 : index
    %c0_4 = arith.constant 0 : index
    %3 = vector.load %arg3[%c0_3, %c0_4] : memref<1x128xf32, #tpu.memory_space<vmem>>, vector<1x128xf32>
    %4 = vector.broadcast %3 : vector<1x128xf32> to vector<16x128xf32>
    %5 = arith.addf %2, %4 : vector<16x128xf32>
    %cst_5 = arith.constant 0.000000e+00 : f32
    %6 = vector.broadcast %cst_5 : f32 to vector<16x128xf32>
    %7 = arith.maximumf %5, %6 : vector<16x128xf32>
    %8 = arith.truncf %7 : vector<16x128xf32> to vector<16x128xbf16>
    %c0_6 = arith.constant 0 : index
    %c0_7 = arith.constant 0 : index
    %9 = vector.load %arg4[%c0_6, %c0_7] : memref<128x128xbf16, #tpu.memory_space<vmem>>, vector<128x128xbf16>
    %cst_8 = arith.constant dense<0.000000e+00> : vector<16x128xf32>
    %10 = tpu.matmul %8, %9, %cst_8 {dimension_numbers = #tpu.dot_dimension_numbers<[1], [0], [0], [1], [0, 0, 1, 1], [], []>} : vector<16x128xbf16>, vector<128x128xbf16>, vector<16x128xf32> -> vector<16x128xf32>
    %c0_9 = arith.constant 0 : index
    %c0_10 = arith.constant 0 : index
    %11 = vector.load %arg5[%c0_9, %c0_10] : memref<1x128xf32, #tpu.memory_space<vmem>>, vector<1x128xf32>
    %12 = vector.broadcast %11 : vector<1x128xf32> to vector<16x128xf32>
    %13 = arith.addf %10, %12 : vector<16x128xf32>
    %c0_11 = arith.constant 0 : index
    %c0_12 = arith.constant 0 : index
    %14 = vector.load %arg6[%c0_11, %c0_12] : memref<16x128xf32, #tpu.memory_space<vmem>>, vector<16x128xf32>
    tpu.vector_store %arg6[%c0_11, %c0_12], %13 {strides = array<i32>} : memref<16x128xf32, #tpu.memory_space<vmem>>, vector<16x128xf32>,
    return
  }
  func.func @transform_0(%arg0: i32) -> (i32, i32) {
    %c0_i32 = arith.constant 0 : i32
    %c0_i32_0 = arith.constant 0 : i32
    return %arg0, %c0_i32 : i32, i32
  }
  func.func @transform_1(%arg0: i32) -> (i32, i32) {
    %c0_i32 = arith.constant 0 : i32
    %c0_i32_0 = arith.constant 0 : i32
    %c0_i32_1 = arith.constant 0 : i32
    return %c0_i32, %c0_i32_0 : i32, i32
  }
  func.func @transform_2(%arg0: i32) -> (i32, i32) {
    %c0_i32 = arith.constant 0 : i32
    %c0_i32_0 = arith.constant 0 : i32
    %c0_i32_1 = arith.constant 0 : i32
    return %c0_i32, %c0_i32_0 : i32, i32
  }
  func.func @transform_3(%arg0: i32) -> (i32, i32) {
    %c0_i32 = arith.constant 0 : i32
    %c0_i32_0 = arith.constant 0 : i32
    %c0_i32_1 = arith.constant 0 : i32
    return %c0_i32, %c0_i32_0 : i32, i32
  }
  func.func @transform_4(%arg0: i32) -> (i32, i32) {
    %c0_i32 = arith.constant 0 : i32
    %c0_i32_0 = arith.constant 0 : i32
    %c0_i32_1 = arith.constant 0 : i32
    return %c0_i32, %c0_i32_0 : i32, i32
  }
  func.func @transform_5(%arg0: i32) -> (i32, i32) {
    %c0_i32 = arith.constant 0 : i32
    %c0_i32_0 = arith.constant 0 : i32
    return %arg0, %c0_i32 : i32, i32
  }
}

</mosaic_0001>

<bundles_post_ra>
// kernel: _forward_impl.1
= control target key start
LH: loop header
LB: loop body
LE: loop exit
PB: predicated region body
PF: predicated region fallthrough
CT: control target
= control target key end

     0   :  { %10 = vsyncpa [#allocation3], 0  ;;  %s564_s0 = inlined_call_operand.vmem [shape: bf16[16,128], index: 0, kind: input, shape index: {}]   ;;  %s565_s1 = inlined_call_operand.hbm [shape: bf16[128,128], index: 1, kind: input, shape index: {}]   ;;  %s566_s2 = inlined_call_operand.vmem [shape: f32[1,128], index: 2, kind: input, shape index: {}]   ;;  %s567_s3 = inlined_call_operand.hbm [shape: bf16[128,128], index: 3, kind: input, shape index: {}]   ;;  %s568_s4 = inlined_call_operand.vmem [shape: f32[1,128], index: 4, kind: input, shape index: {}]   ;;  %s569_s5 = inlined_call_operand.hbm [shape: f32[16,128], index: 5, kind: output, shape index: {}]  }
   0x1   :  { %11 = vsyncpa [#allocation6], 0 }
   0x2   :  { %12 = vsyncpa [#allocation4], 0  ;;  %s480_s18 = smov [#allocation2]   ;;  %s408_s22 = scalar_lea.hbm %s565_s1, 1024 }
   0x3   :  { %s20_s19 = sshll.u32 %s480_s18, 4  ;;  %p409_p0 = scmp.ne.s32.totalorder %s565_s1, %s408_s22  ;;  %s21_s19 = int_to_ptr.vmem [resolvable:$true] %s20_s19 }
   0x4   :  { %p412_p1 = scmp.lt.u32.totalorder %s408_s22, %s565_s1 }
   0x6   :  { %p414_p2 = pnand %p412_p1, %p409_p0 }
   0x8   :  { %417 = shalt.err (!%p414_p2)
}
   0x9   :  { %s418_s27 = scalar_lea.vmem %s21_s19, 1024  ;;  %p423_p4 = scmp.lt.s32.totalorder %s21_s19, %s21_s19 }
   0xa   :  { %p419_p3 = scmp.ne.s32.totalorder %s21_s19, %s418_s27  ;;  %p424_p5 = scmp.lt.s32.totalorder %s418_s27, %s418_s27 }
   0xc   :  { %p425_p6 = por %p424_p5, %p423_p4 }
   0xe   :  { %p426_p7 = pnand %p425_p6, %p419_p3 }
  0x10   :  { %429 = shalt.err (!%p426_p7)
}
  0x11   :  { %s481_s28 = smov 64   ;;  %s482_s29 = smov 4  }
  0x12   :  { %26 = dma.hbm_to_vmem [thread:$0]  %s565_s1, 1024, %s21_s19, [#allocation3], %s481_s28, %s481_s28, %s482_s29  }
  0x13   :  { %s483_s7 = smov [#allocation5]   ;;  %s430_s11 = scalar_lea.hbm %s567_s3, 1024 }
  0x14   :  { %s34_s8 = sshll.u32 %s483_s7, 4  ;;  %p431_p8 = scmp.ne.s32.totalorder %s567_s3, %s430_s11  ;;  %s35_s8 = int_to_ptr.vmem [resolvable:$true] %s34_s8 }
  0x15   :  { %p434_p9 = scmp.lt.u32.totalorder %s430_s11, %s567_s3 }
  0x17   :  { %p436_p10 = pnand %p434_p9, %p431_p8 }
  0x19   :  { %439 = shalt.err (!%p436_p10)
}
  0x1a   :  { %s440_s16 = scalar_lea.vmem %s35_s8, 1024  ;;  %p445_p12 = scmp.lt.s32.totalorder %s35_s8, %s35_s8 }
  0x1b   :  { %p441_p11 = scmp.ne.s32.totalorder %s35_s8, %s440_s16  ;;  %p446_p13 = scmp.lt.s32.totalorder %s440_s16, %s440_s16 }
  0x1d   :  { %p447_p0 = por %p446_p13, %p445_p12 }
  0x1f   :  { %p448_p1 = pnand %p447_p0, %p441_p11 }
  0x21   :  { %451 = shalt.err (!%p448_p1)
}
  0x22   :  { %40 = dma.hbm_to_vmem [thread:$0]  %s567_s3, 1024, %s35_s8, [#allocation6], %s481_s28, %s481_s28, %s482_s29  }
  0x23   :  { %474 = dma.done.wait [#allocation3], 1024  }
  0x24   :  { %475 = vsyncadd [#allocation3], 4294966272 }
  0x25   :  { %476 = dma.done.wait [#allocation6], 1024  }
  0x26   :  { %477 = vsyncadd [#allocation6], 4294966272  ;;  %v484_v0 = vmov 0.0   ;;  %vm485_vm0 = vmmov 0   ;;  %v391_v1 = vld [vmem:[#allocation2] sm:$0xff]   ;;  %v392_v2 = vld [vmem:[#allocation2 + $0x8] sm:$0xff]  }
  0x27   :  { %342 = vmatprep.subr.bf16.mxu0 %v484_v0  ;;  %358 = vmatprep.mubr.msk.bf16.mxu0 %vm485_vm0, %v484_v0  ;;  %v393_v3 = vld [vmem:[#allocation2 + $0x10] sm:$0xff]   ;;  %v400_v4 = vld [vmem:[#allocation5] sm:$0xff]   ;;  %v394_v5 = vld [vmem:[#allocation2 + $0x18] sm:$0xff]   ;;  %s486_s22 = smov [#allocation7]  }
  0x28   :  { %362 = vmatprep.subr.bf16.mxu1 %v484_v0  ;;  %378 = vmatprep.mubr.msk.bf16.mxu1 %vm485_vm0, %v484_v0  ;;  %v401_v6 = vld [vmem:[#allocation5 + $0x8] sm:$0xff]   ;;  %v395_v7 = vld [vmem:[#allocation2 + $0x20] sm:$0xff]   ;;  %v402_v8 = vld [vmem:[#allocation5 + $0x10] sm:$0xff]   ;;  %s292_s23 = sshll.u32 %s486_s22, 4  ;;  %s293_s23 = int_to_ptr.vmem [resolvable:$true] %s292_s23 }
  0x29   :  { %343 = vmatpush3.bf16.msra.mxu0 %v391_v1  ;;  %363 = vmatpush3.bf16.msra.mxu1 %v400_v4  ;;  %v396_v9 = vld [vmem:[#allocation2 + $0x28] sm:$0xff]   ;;  %v403_v10 = vld [vmem:[#allocation5 + $0x18] sm:$0xff]   ;;  %v397_v11 = vld [vmem:[#allocation2 + $0x30] sm:$0xff]   ;;  %p457_p3 = scmp.lt.s32.totalorder %s293_s23, %s293_s23 }
  0x2a   :  { %344 = vmatprep.subr.bf16.mxu0 %v484_v0  ;;  %364 = vmatprep.subr.bf16.mxu1 %v484_v0  ;;  %v404_v12 = vld [vmem:[#allocation5 + $0x20] sm:$0xff]   ;;  %v398_v13 = vld [vmem:[#allocation2 + $0x38] sm:$0xff]   ;;  %v405_v14 = vld [vmem:[#allocation5 + $0x28] sm:$0xff]  }
  0x2b   :  { %v399_v15 = vld [vmem:[%s564_s0] sm:$0xff]   ;;  %v406_v16 = vld [vmem:[#allocation5 + $0x30] sm:$0xff]   ;;  %v407_v17 = vld [vmem:[#allocation5 + $0x38] sm:$0xff]  }
  0x2c   :  { %v305_v18 = vld [vmem:[%s566_s2] ss:$0 sm:$0xff]  ;;  %s452_s2 = scalar_lea.vmem %s293_s23, 256 }
  0x2d   :  { %345 = vmatpush3.bf16.msra.mxu0 %v392_v2  ;;  %365 = vmatpush3.bf16.msra.mxu1 %v401_v6  ;;  %v315_v28 = vld [vmem:[%s568_s4] ss:$0 sm:$0xff]  ;;  %p453_p2 = scmp.ne.s32.totalorder %s293_s23, %s452_s2  ;;  %p458_p4 = scmp.lt.s32.totalorder %s452_s2, %s452_s2 }
  0x2e   :  { %346 = vmatprep.subr.bf16.mxu0 %v484_v0  ;;  %366 = vmatprep.subr.bf16.mxu1 %v484_v0 }
  0x2f   :  { %p459_p5 = por %p458_p4, %p457_p3 }
  0x31   :  { %347 = vmatpush3.bf16.msra.mxu0 %v393_v3  ;;  %367 = vmatpush3.bf16.msra.mxu1 %v402_v8  ;;  %p460_p6 = pnand %p459_p5, %p453_p2 }
  0x32   :  { %348 = vmatprep.subr.bf16.mxu0 %v484_v0  ;;  %368 = vmatprep.subr.bf16.mxu1 %v484_v0 }
  0x35   :  { %349 = vmatpush3.bf16.msra.mxu0 %v394_v5  ;;  %369 = vmatpush3.bf16.msra.mxu1 %v403_v10 }
  0x36   :  { %350 = vmatprep.subr.bf16.mxu0 %v484_v0  ;;  %370 = vmatprep.subr.bf16.mxu1 %v484_v0 }
  0x39   :  { %351 = vmatpush3.bf16.msra.mxu0 %v395_v7  ;;  %371 = vmatpush3.bf16.msra.mxu1 %v404_v12 }
  0x3a   :  { %352 = vmatprep.subr.bf16.mxu0 %v484_v0  ;;  %372 = vmatprep.subr.bf16.mxu1 %v484_v0 }
  0x3d   :  { %353 = vmatpush3.bf16.msra.mxu0 %v396_v9  ;;  %373 = vmatpush3.bf16.msra.mxu1 %v405_v14 }
  0x3e   :  { %354 = vmatprep.subr.bf16.mxu0 %v484_v0  ;;  %374 = vmatprep.subr.bf16.mxu1 %v484_v0 }
  0x41   :  { %355 = vmatpush3.bf16.msra.mxu0 %v397_v11  ;;  %375 = vmatpush3.bf16.msra.mxu1 %v406_v16 }
  0x42   :  { %356 = vmatprep.subr.bf16.mxu0 %v484_v0  ;;  %376 = vmatprep.subr.bf16.mxu1 %v484_v0 }
  0x45   :  { %357 = vmatpush3.bf16.msra.mxu0 %v398_v13  ;;  %377 = vmatpush3.bf16.msra.mxu1 %v407_v17 }
  0x48   :  { %359 = vmatmul.mubr.bf16.vlgmr.msra.gmra.mrb[0].mxu0 %v399_v15 }
 0x11b   :  { %v163_v19 = vpop.f32.mrb[0].mxu0 }
 0x11c   :  { %v164_v20 = vadd.f32 %v305_v18, %v163_v19  ;;  %v360_v21 = vpop.f32.mrb[1].mxu0 }
 0x11d   :  { %v166_v22 = vpop.f32.mrb[2].mxu0 }
 0x11e   :  { %v167_v23 = vadd.f32 %v305_v18, %v166_v22  ;;  %v361_v24 = vpop.f32.mrb[3].mxu0  ;;  %v170_v25 = vmax.f32 %v164_v20, 0.0 }
 0x120   :  { %v171_v26 = vmax.f32 %v167_v23, 0.0 }
 0x122   :  { %v172_v27 = vpack.c.bf16 %v171_v26, %v170_v25 }
 0x124   :  { %379 = vmatmul.mubr.bf16.vlgmr.msra.gmra.mrb[0].mxu1 %v172_v27 }
 0x1f7   :  { %v278_v29 = vpop.f32.mrb[0].mxu1 }
 0x1f8   :  { %v279_v30 = vadd.f32 %v315_v28, %v278_v29  ;;  %v380_v31 = vpop.f32.mrb[1].mxu1 }
 0x1f9   :  { %v281_v32 = vpop.f32.mrb[2].mxu1 }
 0x1fa   :  { %285 = vst [vmem:[#allocation7] sm:$0xff] %v279_v30  ;;  %v282_v33 = vadd.f32 %v315_v28, %v281_v32  ;;  %v381_v34 = vpop.f32.mrb[3].mxu1 }
 0x1fc   :  { %286 = vst [vmem:[#allocation7 + $0x8] sm:$0xff] %v282_v33 }
 0x1fd   :  { %463 = shalt.err (!%p460_p6)
}
 0x1fe   :  { %s464_s25 = scalar_lea.hbm %s569_s5, 256 }
 0x1ff   :  { %p465_p7 = scmp.ne.s32.totalorder %s569_s5, %s464_s25  ;;  %p468_p8 = scmp.lt.u32.totalorder %s464_s25, %s569_s5 }
 0x201   :  { %p470_p9 = pnand %p468_p8, %p465_p7 }
 0x203   :  { %473 = shalt.err (!%p470_p9)
}
 0x204   :  { %s487_s30 = smov 128   ;;  %s488_s6 = smov 8  }
 0x205   :  { %298 = dma.vmem_to_hbm [thread:$0]  %s293_s23, 256, %s569_s5, [#allocation4], %s487_s30, %s487_s30, %s488_s6  }
 0x206   :  { %478 = dma.done.wait [#allocation4], 256  }
 0x207   :  { %479 = vsyncadd [#allocation4], 4294967040 }
 0x208   :  { %302 = vsyncpa [#allocation3], 1 }
 0x209   :  { %303 = vsyncpa [#allocation6], 1 }
 0x20a   :  { %304 = vsyncpa [#allocation4], 1 }

</bundles_post_ra>
